<compile_context>
chip_gen: v7x
topology: tpu7x:2x2x1
jax: 0.10.0
libtpu: 0.0.40
codegen_flags: <defaults>
</compile_context>

<pallas_src>
import functools

import jax
import jax.numpy as jnp
from jax.experimental import pallas as pl
from jax.experimental.pallas import tpu as pltpu


def _round_up(x, m):
    return ((x + m - 1) // m) * m


# ---------------------------------------------------------------------------
# Pallas kernel: one lane-dense (Cout, TM) tile of the im2col matmul + hswish
# ---------------------------------------------------------------------------
def _conv_hswish_kernel(w_ref, p_ref, b_ref, o_ref):
    # w_ref: (Cout, Kp)     conv weight, resident across the whole grid
    # p_ref: (1, Kp, TM)    im2col patch tile for one image: K on sublanes
    # b_ref: (Cout, 1)      bias (f32), resident
    # o_ref: (1, Cout, TM)  lane-dense output tile (f32)
    t1 = jnp.dot(w_ref[...], p_ref[0], preferred_element_type=jnp.float32)
    t1 = t1 + b_ref[...]                             # conv output tile
    t3 = jnp.clip(t1 + 3.0, 0.0, 6.0)
    o_ref[0] = (t1 * t3 * (1.0 / 6.0)).astype(o_ref.dtype)   # t5 = hard-swish(t1)


def _build_patches(x, kh, kw, stride, pad, kp, compute_dtype):
    """x: (N, Cin, H, W) -> im2col patches (N, Kp, Ho*Wo) in compute_dtype.

    Tap ordering along Kp is (kh, kw, cin); the weight matrix is reordered to
    match.  Casting to compute_dtype happens *before* any expansion and the Kp
    zero-padding is folded into the same stack (no extra full-array passes).
    """
    n, cin, h, w = x.shape
    ho = (h + 2 * pad - kh) // stride + 1
    wo = (w + 2 * pad - kw) // stride + 1
    xp = jnp.pad(x.astype(compute_dtype),
                 ((0, 0), (0, 0), (pad, pad), (pad, pad)))
    taps = [xp[:, :, i:i + stride * ho:stride, j:j + stride * wo:stride]
            for i in range(kh) for j in range(kw)]           # each (N, Cin, Ho, Wo)
    patches = jnp.stack(taps, axis=1).reshape(n, kh * kw * cin, ho * wo)
    k = kh * kw * cin
    if kp > k:
        patches = jnp.concatenate(
            [patches, jnp.zeros((n, kp - k, ho * wo), compute_dtype)], axis=1)
    return patches, ho, wo


def _pick_tm(m_img, kp, itemsize):
    # One tile per image when the double-buffered patch block stays well inside
    # the scoped-VMEM default (fewest grid steps, no padding waste); otherwise
    # stream 2048-wide lane-dense tiles (ragged tail handled by Pallas masking).
    if 2 * kp * m_img * itemsize <= 8 * 1024 * 1024:
        return m_img
    return 2048


@functools.partial(jax.jit, static_argnames=("compute_dtype",))
def model_forward(x, conv_w, conv_b, compute_dtype=jnp.bfloat16):
    """x: (N, 4, H, W) f32, conv_w: (8, 4, 7, 7), conv_b: (8,). Returns t5 (NCHW, f32)."""
    n, cin, _, _ = x.shape
    cout, _, kh, kw = conv_w.shape
    k = cin * kh * kw                       # 196
    kp = _round_up(k, 16)                   # 208 — do not pad further (review)

    patches, ho, wo = _build_patches(x, kh, kw, stride=2, pad=3,
                                     kp=kp, compute_dtype=compute_dtype)
    m_img = ho * wo

    # Weight reordered to the patch tap order (kh, kw, cin), zero-padded to Kp.
    w_mat = conv_w.transpose(0, 2, 3, 1).reshape(cout, k)
    w_mat = jnp.pad(w_mat, ((0, 0), (0, kp - k))).astype(compute_dtype)
    b_mat = conv_b.reshape(cout, 1).astype(jnp.float32)

    itemsize = jnp.dtype(compute_dtype).itemsize
    tm = _pick_tm(m_img, kp, itemsize)
    grid = (n, pl.cdiv(m_img, tm))

    cost = pl.CostEstimate(
        flops=2 * n * m_img * kp * cout,
        transcendentals=0,
        bytes_accessed=(n * kp * m_img * itemsize      # patches
                        + cout * kp * itemsize         # weight
                        + cout * 4                     # bias
                        + n * cout * m_img * 4))       # output

    out = pl.pallas_call(
        _conv_hswish_kernel,
        out_shape=jax.ShapeDtypeStruct((n, cout, m_img), jnp.float32),
        grid=grid,
        in_specs=[
            pl.BlockSpec((cout, kp), lambda b, t: (0, 0)),       # weight (resident)
            pl.BlockSpec((1, kp, tm), lambda b, t: (b, 0, t)),   # patch tile
            pl.BlockSpec((cout, 1), lambda b, t: (0, 0)),        # bias (resident)
        ],
        out_specs=pl.BlockSpec((1, cout, tm), lambda b, t: (b, 0, t)),
        compiler_params=pltpu.CompilerParams(
            # TODO(synk): on v7x, switch to pltpu.CORE_PARALLEL on the image /
            # tile axes if plain "parallel" does not shard across the two TCs.
            dimension_semantics=("parallel", "parallel"),
        ),
        cost_estimate=cost,
    )(w_mat, patches, b_mat)

    # (N, Cout, Ho*Wo) -> (N, Cout, Ho, Wo): pure reshape, no transpose pass.
    return out.reshape(n, cout, ho, wo)


def _reference(x, conv_w, conv_b):
    """Plain-JAX reference for correctness check."""
    t1 = jax.lax.conv_general_dilated(
        x, conv_w, window_strides=(2, 2), padding=((3, 3), (3, 3)),
        dimension_numbers=("NCHW", "OIHW", "NCHW"))
    t1 = t1 + conv_b.reshape(1, -1, 1, 1)
    t3 = jnp.clip(t1 + 3.0, 0.0, 6.0)
    return t1 * t3 / 6.0


if __name__ == "__main__":
    key = jax.random.PRNGKey(0)
    kx, kw1, kb1 = jax.random.split(key, 3)

    # Small shapes consistent with the module: N=2, Cin=4, 16x16 spatial.
    x = jax.random.normal(kx, (2, 4, 16, 16), dtype=jnp.float32)

    # Deterministic parameter init (Conv2d(4, 8, 7, stride=2, pad=3)).
    fan_in = 4 * 7 * 7
    bound = 1.0 / (fan_in ** 0.5)
    conv_w = jax.random.uniform(kw1, (8, 4, 7, 7), jnp.float32, -bound, bound)
    conv_b = jax.random.uniform(kb1, (8,), jnp.float32, -bound, bound)

    ref = _reference(x, conv_w, conv_b)

    # f32 MXU-feed path (validation).  Tolerance leaves margin for a possible
    # bf16-pass MXU default on f32 operands; structural bugs give O(1) errors.
    out_f32 = jax.block_until_ready(
        model_forward(x, conv_w, conv_b, compute_dtype=jnp.float32))
    assert out_f32.shape == ref.shape == (2, 8, 8, 8), out_f32.shape
    assert jnp.allclose(out_f32, ref, atol=1e-2, rtol=1e-2), "f32 mismatch vs reference"

    # Default bf16 MXU-feed path (recommended on v5e/v6e/v7x): looser tolerance.
    out_bf16 = jax.block_until_ready(model_forward(x, conv_w, conv_b))
    assert out_bf16.shape == ref.shape, out_bf16.shape
    assert jnp.allclose(out_bf16, ref, atol=3e-2, rtol=3e-2), "bf16 mismatch vs reference"

    print("KERNEL_OK")
</pallas_src>

<mosaic_0001>
module attributes {stable_mosaic.version = 11 : i64} {
  func.func @_conv_hswish_kernel(%arg0: i32, %arg1: i32, %arg2: memref<8x208xf32, #tpu.memory_space<vmem>>, %arg3: memref<1x208x64xf32, #tpu.memory_space<vmem>>, %arg4: memref<8x1xf32, #tpu.memory_space<vmem>>, %arg5: memref<1x8x64xf32, #tpu.memory_space<vmem>>) attributes {dimension_semantics = [#tpu.dimension_semantics<parallel>, #tpu.dimension_semantics<parallel>], iteration_bounds = array<i64: 2, 1>, scalar_prefetch = 0 : i64, scratch_operands = 0 : i64, tpu.core_type = #tpu.core_type<tc>, window_params = [{pipeline_mode = #tpu.pipeline_mode<synchronous>, transform_indices = @transform_0, window_bounds = array<i64: 8, 208>}, {transform_indices = @transform_1, window_bounds = array<i64: 1, 208, 64>}, {pipeline_mode = #tpu.pipeline_mode<synchronous>, transform_indices = @transform_2, window_bounds = array<i64: 8, 1>}, {transform_indices = @transform_3, window_bounds = array<i64: 1, 8, 64>}]} {
    %c0 = arith.constant 0 : index
    %c0_0 = arith.constant 0 : index
    %0 = vector.load %arg2[%c0, %c0_0] : memref<8x208xf32, #tpu.memory_space<vmem>>, vector<8x208xf32>
    %c0_1 = arith.constant 0 : index
    %c0_2 = arith.constant 0 : index
    %c0_3 = arith.constant 0 : index
    %1 = vector.load %arg3[%c0_1, %c0_2, %c0_3] : memref<1x208x64xf32, #tpu.memory_space<vmem>>, vector<1x208x64xf32>
    %2 = vector.shape_cast %1 : vector<1x208x64xf32> to vector<208x64xf32>
    %cst = arith.constant dense<0.000000e+00> : vector<8x64xf32>
    %3 = tpu.matmul %0, %2, %cst {dimension_numbers = #tpu.dot_dimension_numbers<[1], [0], [0], [1], [0, 0, 1, 1], [], []>} : vector<8x208xf32>, vector<208x64xf32>, vector<8x64xf32> -> vector<8x64xf32>
    %c0_4 = arith.constant 0 : index
    %c0_5 = arith.constant 0 : index
    %4 = vector.load %arg4[%c0_4, %c0_5] : memref<8x1xf32, #tpu.memory_space<vmem>>, vector<8x1xf32>
    %5 = vector.broadcast %4 : vector<8x1xf32> to vector<8x64xf32>
    %6 = arith.addf %3, %5 : vector<8x64xf32>
    %cst_6 = arith.constant 3.000000e+00 : f32
    %7 = vector.broadcast %cst_6 : f32 to vector<8x64xf32>
    %8 = arith.addf %6, %7 : vector<8x64xf32>
    %cst_7 = arith.constant 0.000000e+00 : f32
    %cst_8 = arith.constant 6.000000e+00 : f32
    %9 = vector.broadcast %cst_7 : f32 to vector<8x64xf32>
    %10 = arith.maximumf %9, %8 : vector<8x64xf32>
    %11 = vector.broadcast %cst_8 : f32 to vector<8x64xf32>
    %12 = arith.minimumf %11, %10 : vector<8x64xf32>
    %13 = arith.mulf %6, %12 : vector<8x64xf32>
    %cst_9 = arith.constant 0.166666672 : f32
    %14 = vector.broadcast %cst_9 : f32 to vector<8x64xf32>
    %15 = arith.mulf %13, %14 : vector<8x64xf32>
    %c0_10 = arith.constant 0 : index
    %c0_11 = arith.constant 0 : index
    %c0_12 = arith.constant 0 : index
    %16 = vector.load %arg5[%c0_10, %c0_11, %c0_12] : memref<1x8x64xf32, #tpu.memory_space<vmem>>, vector<1x8x64xf32>
    %17 = vector.shape_cast %16 : vector<1x8x64xf32> to vector<8x64xf32>
    %18 = vector.shape_cast %15 : vector<8x64xf32> to vector<1x8x64xf32>
    tpu.vector_store %arg5[%c0_10, %c0_11, %c0_12], %18 {strides = array<i32>} : memref<1x8x64xf32, #tpu.memory_space<vmem>>, vector<1x8x64xf32>,
    return
  }
  func.func @transform_0(%arg0: i32, %arg1: i32) -> (i32, i32) {
    %c0_i32 = arith.constant 0 : i32
    %c0_i32_0 = arith.constant 0 : i32
    %c0_i32_1 = arith.constant 0 : i32
    return %c0_i32, %c0_i32_0 : i32, i32
  }
  func.func @transform_1(%arg0: i32, %arg1: i32) -> (i32, i32, i32) {
    %c0_i32 = arith.constant 0 : i32
    %c0_i32_0 = arith.constant 0 : i32
    return %arg0, %c0_i32, %arg1 : i32, i32, i32
  }
  func.func @transform_2(%arg0: i32, %arg1: i32) -> (i32, i32) {
    %c0_i32 = arith.constant 0 : i32
    %c0_i32_0 = arith.constant 0 : i32
    %c0_i32_1 = arith.constant 0 : i32
    return %c0_i32, %c0_i32_0 : i32, i32
  }
  func.func @transform_3(%arg0: i32, %arg1: i32) -> (i32, i32, i32) {
    %c0_i32 = arith.constant 0 : i32
    %c0_i32_0 = arith.constant 0 : i32
    return %arg0, %c0_i32, %arg1 : i32, i32, i32
  }
}

</mosaic_0001>

<bundles_post_ra>
// kernel: model_forward.1
= control target key start
LH: loop header
LB: loop body
LE: loop exit
PB: predicated region body
PF: predicated region fallthrough
CT: control target
= control target key end

     0   :  { %s515_s12 = smov 0   ;;  %s517_s13 = smov 0   ;;  %s602_s0 = inlined_call_operand.vmem [shape: f32[8,208], index: 0, kind: input, shape index: {}]   ;;  %s603_s1 = inlined_call_operand.vmem [shape: f32[2,208,64], index: 1, kind: input, shape index: {}]   ;;  %s604_s2 = inlined_call_operand.vmem [shape: f32[8,1], index: 2, kind: input, shape index: {}]   ;;  %s605_s3 = inlined_call_operand.vmem [shape: f32[2,8,64], index: 3, kind: output, shape index: {}]  }
   0x1   :  { %s519_s14 = smov 0  }
   0x2 LB: > { %s25_s15 = sadd.s32 1, %s487_s13  ;;  %p396_p0 = scmp.ge.s32.totalorder %s491_s14, 1  ;;  %s491_s14 = sphi %s519_s14, %s13_s14   ;;  %s487_s13 = sphi %s517_s13, %s607_s13   ;;  %s483_s12 = sphi %s515_s12, %s606_s12  }
   0x3   : > { %p27_p1 = scmp.ge.s32.totalorder %s25_s15, 2  ;;  %p156_p2 = scmp.lt.s32.totalorder %s491_s14, 3 }
   0x5   : > { %s609_s15 = smov (%p27_p1, %s25_s15), 0  ;;  %p157_p3 = pnand %p396_p0, %p156_p2 }
   0x6   : > { %p185_p4 = scmp.lt.s32.totalorder (!%p157_p3), %s483_s12, 1  ;;  %v201_v0 = vld [vmem:[%s602_s0 + $0x8] sm:$0xff] (!%p157_p3)  ;;  %vm234_vm0 = vcmask (!%p157_p3), 654336   ;;  %v493_v1 = vmov (!%p157_p3), 0.0|0.0   ;;  %v228_v2 = vld [vmem:[%s604_s2] sm:$0xff] (!%p157_p3)  ;;  %v494_v3 = vmov (!%p157_p3), 0  }
   0x7   : > { %160 = sbr.rel (%p157_p3) target bundleno = 297 (0x129), region = 32  ;;  %402 = vmatprep.subr.bf16.mxu0 (!%p157_p3), %v493_v1  ;;  %399 = vmatprep.mubr.msk.f32.mxu0 (!%p157_p3), %vm234_vm0, %v201_v0  ;;  %v200_v43 = vld [vmem:[%s602_s0] sm:$0xff] (!%p157_p3)  ;;  %vm313_vm1 = vcmask (!%p157_p3), 523264  }
   0x8   : > { %468 = vset.pattern.permute.xlu0 (!%p157_p3), %v494_v3 }
   0x9   : > { %231 = vperm.xlu0 (!%p157_p3), %468, %v228_v2  }
   0xe   : > { %s611_s12 = smov (!%p185_p4, %s483_s12), 1 }
   0xf   : > { %s441_s20 = smul.u32 208, %s611_s12  ;;  %s398_s26 = sshll.u32 %s611_s12, 3 }
  0x10   : > { %s199_s29 = scalar_lea.vmem %s605_s3, %s398_s26 }
  0x11   : > { %s546_s23 = scalar_lea.vmem %s603_s1, %s441_s20 }
  0x12   : > { %v202_v4 = vld [vmem:[%s546_s23] sm:$0xff]  ;;  %v203_v5 = vld [vmem:[%s546_s23 + $0x8] sm:$0xff]  ;;  %v204_v6 = vld [vmem:[%s546_s23 + $0x10] sm:$0xff] }
  0x13   : > { %v403_v7 = vpack.c.bf16 %v203_v5, %v202_v4  ;;  %v205_v8 = vld [vmem:[%s546_s23 + $0x18] sm:$0xff]  ;;  %v206_v10 = vld [vmem:[%s546_s23 + $0x20] sm:$0xff]  ;;  %v207_v11 = vld [vmem:[%s546_s23 + $0x28] sm:$0xff] }
  0x14   : > { %v406_v9 = vpack.c.bf16 %v205_v8, %v204_v6  ;;  %v409_v12 = vpack.c.bf16 %v207_v11, %v206_v10  ;;  %v208_v13 = vld [vmem:[%s546_s23 + $0x30] sm:$0xff]  ;;  %v209_v14 = vld [vmem:[%s546_s23 + $0x38] sm:$0xff]  ;;  %v210_v16 = vld [vmem:[%s546_s23 + $0x40] sm:$0xff] }
  0x15   : > { %404 = vmatpush1.bf16.msra.mxu0 %v403_v7  ;;  %v412_v15 = vpack.c.bf16 %v209_v14, %v208_v13  ;;  %v211_v17 = vld [vmem:[%s546_s23 + $0x48] sm:$0xff]  ;;  %v212_v19 = vld [vmem:[%s546_s23 + $0x50] sm:$0xff]  ;;  %v213_v20 = vld [vmem:[%s546_s23 + $0x58] sm:$0xff] }
  0x16   : > { %405 = vmatprep.subr.bf16.mxu0 %v493_v1  ;;  %v415_v18 = vpack.c.bf16 %v211_v17, %v210_v16  ;;  %v418_v21 = vpack.c.bf16 %v213_v20, %v212_v19  ;;  %v214_v22 = vld [vmem:[%s546_s23 + $0x60] sm:$0xff]  ;;  %v215_v23 = vld [vmem:[%s546_s23 + $0x68] sm:$0xff]  ;;  %v216_v25 = vld [vmem:[%s546_s23 + $0x70] sm:$0xff] }
  0x17   : > { %v421_v24 = vpack.c.bf16 %v215_v23, %v214_v22  ;;  %v217_v26 = vld [vmem:[%s546_s23 + $0x78] sm:$0xff]  ;;  %v218_v28 = vld [vmem:[%s546_s23 + $0x80] sm:$0xff]  ;;  %v219_v29 = vld [vmem:[%s546_s23 + $0x88] sm:$0xff] }
  0x18   : > { %v424_v27 = vpack.c.bf16 %v217_v26, %v216_v25  ;;  %v427_v30 = vpack.c.bf16 %v219_v29, %v218_v28  ;;  %v220_v31 = vld [vmem:[%s546_s23 + $0x90] sm:$0xff]  ;;  %v221_v32 = vld [vmem:[%s546_s23 + $0x98] sm:$0xff]  ;;  %v222_v34 = vld [vmem:[%s546_s23 + $0xa0] sm:$0xff] }
  0x19   : > { %407 = vmatpush1.bf16.msra.mxu0 %v406_v9  ;;  %v430_v33 = vpack.c.bf16 %v221_v32, %v220_v31  ;;  %v223_v35 = vld [vmem:[%s546_s23 + $0xa8] sm:$0xff]  ;;  %v224_v37 = vld [vmem:[%s546_s23 + $0xb0] sm:$0xff]  ;;  %v225_v38 = vld [vmem:[%s546_s23 + $0xb8] sm:$0xff] }
  0x1a   : > { %408 = vmatprep.subr.bf16.mxu0 %v493_v1  ;;  %v433_v36 = vpack.c.bf16 %v223_v35, %v222_v34  ;;  %v436_v39 = vpack.c.bf16 %v225_v38, %v224_v37  ;;  %v226_v40 = vld [vmem:[%s546_s23 + $0xc0] sm:$0xff]  ;;  %v227_v41 = vld [vmem:[%s546_s23 + $0xc8] sm:$0xff] }
  0x1b   : > { %v439_v42 = vpack.c.bf16 %v227_v41, %v226_v40 }
  0x1d   : > { %410 = vmatpush1.bf16.msra.mxu0 %v409_v12 }
  0x1e   : > { %411 = vmatprep.subr.bf16.mxu0 %v493_v1 }
  0x21   : > { %413 = vmatpush1.bf16.msra.mxu0 %v412_v15 }
  0x22   : > { %414 = vmatprep.subr.bf16.mxu0 %v493_v1 }
  0x25   : > { %416 = vmatpush1.bf16.msra.mxu0 %v415_v18 }
  0x26   : > { %417 = vmatprep.subr.bf16.mxu0 %v493_v1 }
  0x29   : > { %419 = vmatpush1.bf16.msra.mxu0 %v418_v21 }
  0x2a   : > { %420 = vmatprep.subr.bf16.mxu0 %v493_v1 }
  0x2d   : > { %422 = vmatpush1.bf16.msra.mxu0 %v421_v24 }
  0x2e   : > { %423 = vmatprep.subr.bf16.mxu0 %v493_v1 }
  0x31   : > { %425 = vmatpush1.bf16.msra.mxu0 %v424_v27 }
  0x32   : > { %426 = vmatprep.subr.bf16.mxu0 %v493_v1 }
  0x35   : > { %428 = vmatpush1.bf16.msra.mxu0 %v427_v30 }
  0x36   : > { %429 = vmatprep.subr.bf16.mxu0 %v493_v1 }
  0x39   : > { %431 = vmatpush1.bf16.msra.mxu0 %v430_v33 }
  0x3a   : > { %432 = vmatprep.subr.bf16.mxu0 %v493_v1 }
  0x3d   : > { %434 = vmatpush1.bf16.msra.mxu0 %v433_v36 }
  0x3e   : > { %435 = vmatprep.subr.bf16.mxu0 %v493_v1 }
  0x41   : > { %437 = vmatpush1.bf16.msra.mxu0 %v436_v39 }
  0x42   : > { %438 = vmatprep.subr.bf16.mxu0 %v493_v1 }
  0x45   : > { %440 = vmatpush1.bf16.msra.mxu0 %v439_v42 }
  0x48   : > { %303 = vmatmul.mubr.f32.vlgmr.msra.gmra.mrb[0].mxu0 %v200_v43 }
  0x88   : > { %v232_v44 = vpop.permute.xlu0 %231 }
 0x11b   : > { %v304_v45 = vpop.f32.mrb[0].mxu0 }
 0x11c   : > { %v305_v46 = vadd.f32 %v304_v45, %v232_v44  ;;  %v306_v47 = vpop.f32.mrb[1].mxu0 }
 0x11e   : > { %v308_v48 = vadd.f32 3.0, %v305_v46 }
 0x120   : > { %v309_v49 = vmax.f32 %v308_v48, 0.0 }
 0x122   : > { %v310_v50 = vmin.f32 %v309_v49, 6.0 }
 0x124   : > { %v311_v51 = vmul.f32 %v310_v50, %v305_v46 }
 0x126   : > { %v312_v52 = vmul.f32 0.16666667, %v311_v51 }
 0x128   : > { %314 = vst.msk [vmem:[%s199_s29] sm:$0xff] %vm313_vm1, %v312_v52 }
 0x129 PF: > { %s13_s14 = sadd.s32 1, %s491_s14   ;;  %s606_s12 = smov %s487_s13 }
 0x12a   : > { %p10_p5 = scmp.ge.s32.totalorder %s13_s14, 4   ;;  %s607_s13 = smov %s609_s15 }
 0x12c   :  { %12 = sbr.rel (!%p10_p5) target bundleno = 2 (0x2), region = 62 }

</bundles_post_ra>
